<compile_context>
chip_gen: v5e
topology: v5e:2x2
jax: 0.10.0
libtpu: 0.0.40
codegen_flags: <defaults>
</compile_context>

<pallas_src>
import functools

import jax
import jax.numpy as jnp
from jax.experimental import pallas as pl
from jax.experimental.pallas import tpu as pltpu


def _round_up(x, m):
    return ((x + m - 1) // m) * m


def _gemm_bias_act_kernel(x_ref, w_ref, b_ref, o_ref, *, activate,
                          negative_slope):
    # x_ref: (TM, K_p)    w_ref: (K_p, Cout_p)
    # b_ref: (1, Cout_p)  o_ref: (TM, Cout_p)
    acc = jnp.dot(x_ref[...], w_ref[...], preferred_element_type=jnp.float32)
    acc = acc + b_ref[...].astype(jnp.float32)          # (1, Cout_p) broadcast
    if activate:
        acc = jnp.where(acc >= 0.0, acc, negative_slope * acc)
    o_ref[...] = acc.astype(o_ref.dtype)


def conv_block_forward(x_nchw, weight_oihw, bias, *, kernel_size, stride,
                       padding='same', activate=True, negative_slope=0.2):
    kH, kW = kernel_size
    sH, sW = stride
    N, Cin, H, W = x_nchw.shape
    Cout = weight_oihw.shape[0]

    if padding == 'same':
        pad = kH - 1
        # F.pad(x, (0, 0, 0, pad)) on NCHW: pad H at the bottom only.
        x_nchw = jnp.pad(x_nchw, ((0, 0), (0, 0), (0, pad), (0, 0)))
    elif padding != 'valid':
        raise ValueError("padding must be 'same' or 'valid'")

    Hp, Wp = x_nchw.shape[2], x_nchw.shape[3]
    Ho = (Hp - kH) // sH + 1
    Wo = (Wp - kW) // sW + 1

    # Channels-last for im2col.
    # TODO(synk): in the full EffCRN network keep activations channels-last
    # end-to-end and hoist these per-layer transposes to the model boundary.
    x_nhwc = jnp.transpose(x_nchw, (0, 2, 3, 1))            # (N, Hp, Wp, Cin)

    # im2col with static (compile-time) strided slices; K ordered (kh, kw, cin).
    cols = []
    for kh in range(kH):
        for kw in range(kW):
            cols.append(x_nhwc[:, kh:kh + (Ho - 1) * sH + 1:sH,
                               kw:kw + (Wo - 1) * sW + 1:sW, :])
    patches = jnp.concatenate(cols, axis=-1)                # (N, Ho, Wo, K)
    K = kH * kW * Cin
    M = N * Ho * Wo
    x2d = patches.reshape(M, K)

    # Weights OIHW -> (K, Cout) with the same (kh, kw, cin) ordering.
    w2d = jnp.transpose(weight_oihw, (2, 3, 1, 0)).reshape(K, Cout)

    # Pad to lane/sublane-friendly sizes (unmasked, full-vreg loads/stores).
    K_p = _round_up(K, 128)
    Cout_p = _round_up(Cout, 128)
    if M >= 256:
        TM = 256
        M_p = _round_up(M, TM)
    else:
        M_p = _round_up(M, 8)
        TM = M_p

    x2d = jnp.pad(x2d, ((0, M_p - M), (0, K_p - K)))
    w2d = jnp.pad(w2d, ((0, K_p - K), (0, Cout_p - Cout)))
    b2 = jnp.pad(bias.reshape(1, Cout), ((0, 0), (0, Cout_p - Cout)))

    kernel = functools.partial(_gemm_bias_act_kernel,
                               activate=activate,
                               negative_slope=negative_slope)

    out2d = pl.pallas_call(
        kernel,
        out_shape=jax.ShapeDtypeStruct((M_p, Cout_p), x_nhwc.dtype),
        grid=(M_p // TM,),
        in_specs=[
            pl.BlockSpec((TM, K_p), lambda i: (i, 0)),       # im2col row tile
            pl.BlockSpec((K_p, Cout_p), lambda i: (0, 0)),   # resident weights
            pl.BlockSpec((1, Cout_p), lambda i: (0, 0)),     # resident bias
        ],
        out_specs=pl.BlockSpec((TM, Cout_p), lambda i: (i, 0)),
        compiler_params=pltpu.CompilerParams(
            dimension_semantics=("parallel",)),
    )(x2d, w2d, b2)

    out = out2d[:M, :Cout].reshape(N, Ho, Wo, Cout)
    return jnp.transpose(out, (0, 3, 1, 2))                 # back to NCHW


if __name__ == "__main__":
    key = jax.random.PRNGKey(0)
    k_x, k_w, k_b = jax.random.split(key, 3)

    # Small shapes consistent with the module: NCHW input, Conv2d(4 -> 8, (2,3), (1,2))
    N, Cin, H, W = 2, 4, 16, 16
    Cout = 8
    kernel_size = (2, 3)
    stride = (1, 2)

    x = jax.random.normal(k_x, (N, Cin, H, W), jnp.float32)

    # Deterministic PyTorch-style uniform init (kaiming-uniform-like bounds).
    fan_in = Cin * kernel_size[0] * kernel_size[1]
    limit = 1.0 / (fan_in ** 0.5)
    weight = jax.random.uniform(k_w, (Cout, Cin, kernel_size[0], kernel_size[1]),
                                jnp.float32, -limit, limit)
    bias = jax.random.uniform(k_b, (Cout,), jnp.float32, -limit, limit)

    out = conv_block_forward(x, weight, bias, kernel_size=kernel_size,
                             stride=stride, padding='same', activate=True)
    out = jax.block_until_ready(out)

    # Pure-JAX reference (same math) for a correctness check.
    pad = kernel_size[0] - 1
    x_pad = jnp.pad(x, ((0, 0), (0, 0), (0, pad), (0, 0)))
    ref = jax.lax.conv_general_dilated(
        jnp.transpose(x_pad, (0, 2, 3, 1)),
        jnp.transpose(weight, (2, 3, 1, 0)),
        window_strides=stride, padding='VALID',
        dimension_numbers=('NHWC', 'HWIO', 'NHWC'))
    ref = ref + bias[None, None, None, :]
    ref = jnp.where(ref >= 0.0, ref, 0.2 * ref)
    ref = jnp.transpose(ref, (0, 3, 1, 2))

    assert out.shape == ref.shape, (out.shape, ref.shape)
    assert jnp.allclose(out, ref, atol=1e-4, rtol=1e-4)
    print("KERNEL_OK")
</pallas_src>

<mosaic_0001>
module attributes {stable_mosaic.version = 11 : i64} {
  func.func @_gemm_bias_act_kernel(%arg0: i32, %arg1: memref<224x128xf32, #tpu.memory_space<vmem>>, %arg2: memref<128x128xf32, #tpu.memory_space<vmem>>, %arg3: memref<1x128xf32, #tpu.memory_space<vmem>>, %arg4: memref<224x128xf32, #tpu.memory_space<vmem>>) attributes {dimension_semantics = [#tpu.dimension_semantics<parallel>], iteration_bounds = array<i64: 1>, scalar_prefetch = 0 : i64, scratch_operands = 0 : i64, tpu.core_type = #tpu.core_type<tc>, window_params = [{transform_indices = @transform_0, window_bounds = array<i64: 224, 128>}, {pipeline_mode = #tpu.pipeline_mode<synchronous>, transform_indices = @transform_1, window_bounds = array<i64: 128, 128>}, {pipeline_mode = #tpu.pipeline_mode<synchronous>, transform_indices = @transform_2, window_bounds = array<i64: 1, 128>}, {transform_indices = @transform_3, window_bounds = array<i64: 224, 128>}]} {
    %c0 = arith.constant 0 : index
    %c0_0 = arith.constant 0 : index
    %0 = vector.load %arg1[%c0, %c0_0] : memref<224x128xf32, #tpu.memory_space<vmem>>, vector<224x128xf32>
    %c0_1 = arith.constant 0 : index
    %c0_2 = arith.constant 0 : index
    %1 = vector.load %arg2[%c0_1, %c0_2] : memref<128x128xf32, #tpu.memory_space<vmem>>, vector<128x128xf32>
    %cst = arith.constant dense<0.000000e+00> : vector<224x128xf32>
    %2 = tpu.matmul %0, %1, %cst {dimension_numbers = #tpu.dot_dimension_numbers<[1], [0], [0], [1], [0, 0, 1, 1], [], []>} : vector<224x128xf32>, vector<128x128xf32>, vector<224x128xf32> -> vector<224x128xf32>
    %c0_3 = arith.constant 0 : index
    %c0_4 = arith.constant 0 : index
    %3 = vector.load %arg3[%c0_3, %c0_4] : memref<1x128xf32, #tpu.memory_space<vmem>>, vector<1x128xf32>
    %4 = vector.broadcast %3 : vector<1x128xf32> to vector<224x128xf32>
    %5 = arith.addf %2, %4 : vector<224x128xf32>
    %cst_5 = arith.constant 0.000000e+00 : f32
    %6 = vector.broadcast %cst_5 : f32 to vector<224x128xf32>
    %7 = arith.cmpf oge, %5, %6 : vector<224x128xf32>
    %cst_6 = arith.constant 2.000000e-01 : f32
    %8 = vector.broadcast %cst_6 : f32 to vector<224x128xf32>
    %9 = arith.mulf %8, %5 : vector<224x128xf32>
    %10 = arith.select %7, %5, %9 : vector<224x128xi1>, vector<224x128xf32>
    %c0_7 = arith.constant 0 : index
    %c0_8 = arith.constant 0 : index
    %11 = vector.load %arg4[%c0_7, %c0_8] : memref<224x128xf32, #tpu.memory_space<vmem>>, vector<224x128xf32>
    tpu.vector_store %arg4[%c0_7, %c0_8], %10 {strides = array<i32>} : memref<224x128xf32, #tpu.memory_space<vmem>>, vector<224x128xf32>,
    return
  }
  func.func @transform_0(%arg0: i32) -> (i32, i32) {
    %c0_i32 = arith.constant 0 : i32
    %c0_i32_0 = arith.constant 0 : i32
    return %arg0, %c0_i32 : i32, i32
  }
  func.func @transform_1(%arg0: i32) -> (i32, i32) {
    %c0_i32 = arith.constant 0 : i32
    %c0_i32_0 = arith.constant 0 : i32
    %c0_i32_1 = arith.constant 0 : i32
    return %c0_i32, %c0_i32_0 : i32, i32
  }
  func.func @transform_2(%arg0: i32) -> (i32, i32) {
    %c0_i32 = arith.constant 0 : i32
    %c0_i32_0 = arith.constant 0 : i32
    %c0_i32_1 = arith.constant 0 : i32
    return %c0_i32, %c0_i32_0 : i32, i32
  }
  func.func @transform_3(%arg0: i32) -> (i32, i32) {
    %c0_i32 = arith.constant 0 : i32
    %c0_i32_0 = arith.constant 0 : i32
    return %arg0, %c0_i32 : i32, i32
  }
}

</mosaic_0001>

<bundles_post_ra>
// kernel: tpu_custom_call.1
= control target key start
LH: loop header
LB: loop body
LE: loop exit
PB: predicated region body
PF: predicated region fallthrough
CT: control target
= control target key end

     0   :  { %8 = vsyncpa [#allocation3], 0  ;;  %s536_s0 = inlined_call_operand.hbm [shape: f32[224,128], index: 0, kind: input, shape index: {}]   ;;  %s537_s1 = inlined_call_operand.hbm [shape: f32[128,128], index: 1, kind: input, shape index: {}]   ;;  %s538_s2 = inlined_call_operand.vmem [shape: f32[1,128], index: 2, kind: input, shape index: {}]   ;;  %s539_s3 = inlined_call_operand.hbm [shape: f32[224,128], index: 3, kind: output, shape index: {}]  }
   0x1   :  { %9 = vsyncpa [#allocation6], 0 }
   0x2   :  { %10 = vsyncpa [#allocation4], 0  ;;  %s15_s14 = sshll.u32 %s536_s0, 4  ;;  %s460_s15 = smov [#allocation2]   ;;  %s16_s14 = int_to_ptr.hbm [resolvable:$true] %s15_s14 }
   0x3   :  { %s17_s16 = sshll.u32 %s460_s15, 4  ;;  %s28_s19 = sshll.u32 %s537_s1, 4  ;;  %s18_s16 = int_to_ptr.vmem [resolvable:$true] %s17_s16  ;;  %s29_s19 = int_to_ptr.hbm [resolvable:$true] %s28_s19 }
   0x4   :  { %s461_s20 = smov 128   ;;  %s462_s21 = smov 8  }
   0x5   :  { %23 = dma.hbm_to_vmem [thread:$0]  %s16_s14, 3584, %s18_s16, [#allocation3], %s461_s20, %s461_s20, %s462_s21  }
   0x6   :  { %s463_s22 = smov [#allocation5]  }
   0x7   :  { %s30_s23 = sshll.u32 %s463_s22, 4  ;;  %s31_s23 = int_to_ptr.vmem [resolvable:$true] %s30_s23 }
   0x8   :  { %36 = dma.hbm_to_vmem [thread:$0]  %s29_s19, 2048, %s31_s23, [#allocation6], %s461_s20, %s461_s20, %s462_s21  }
   0x9   :  { %454 = dma.done.wait [#allocation3], 3584  }
   0xa   :  { %455 = vsyncadd [#allocation3], 4294963712 }
   0xb   :  { %456 = dma.done.wait [#allocation6], 2048  }
   0xc   :  { %457 = vsyncadd [#allocation6], 4294965248  ;;  %v90_v0 = vld [vmem:[#allocation5 + $0x78] sm:$0xff]  ;;  %v89_v1 = vld [vmem:[#allocation5 + $0x70] sm:$0xff]  ;;  %s314_s27 = sshll.u32 %s539_s3, 4  ;;  %s315_s27 = int_to_ptr.hbm [resolvable:$true] %s314_s27 }
   0xd   :  { %329 = vmatpush.msra.mxu2 %v90_v0  ;;  %330 = vmatpush.msra.mxu3 %v90_v0  ;;  %v88_v2 = vld [vmem:[#allocation5 + $0x68] sm:$0xff]  ;;  %v87_v3 = vld [vmem:[#allocation5 + $0x60] sm:$0xff]  ;;  %v86_v4 = vld [vmem:[#allocation5 + $0x58] sm:$0xff] }
   0xe   :  { %95 = vmatpush.msra.mxu0 %v90_v0  ;;  %328 = vmatpush.msra.mxu1 %v90_v0  ;;  %v85_v5 = vld [vmem:[#allocation5 + $0x50] sm:$0xff]  ;;  %v84_v6 = vld [vmem:[#allocation5 + $0x48] sm:$0xff]  ;;  %v83_v7 = vld [vmem:[#allocation5 + $0x40] sm:$0xff] }
   0xf   :  { %332 = vmatpush.msra.mxu2 %v89_v1  ;;  %333 = vmatpush.msra.mxu3 %v89_v1  ;;  %v82_v8 = vld [vmem:[#allocation5 + $0x38] sm:$0xff]  ;;  %v81_v9 = vld [vmem:[#allocation5 + $0x30] sm:$0xff]  ;;  %v80_v10 = vld [vmem:[#allocation5 + $0x28] sm:$0xff] }
  0x10   :  { %96 = vmatpush.msra.mxu0 %v89_v1  ;;  %331 = vmatpush.msra.mxu1 %v89_v1  ;;  %v79_v11 = vld [vmem:[#allocation5 + $0x20] sm:$0xff]  ;;  %v78_v12 = vld [vmem:[#allocation5 + $0x18] sm:$0xff]  ;;  %v77_v13 = vld [vmem:[#allocation5 + $0x10] sm:$0xff] }
  0x11   :  { %335 = vmatpush.msra.mxu2 %v88_v2  ;;  %336 = vmatpush.msra.mxu3 %v88_v2  ;;  %v76_v14 = vld [vmem:[#allocation5 + $0x8] sm:$0xff]  ;;  %v75_v15 = vld [vmem:[#allocation5] sm:$0xff]  ;;  %v61_v16 = vld [vmem:[#allocation2 + $0x70] sm:$0xff] }
  0x12   :  { %97 = vmatpush.msra.mxu0 %v88_v2  ;;  %334 = vmatpush.msra.mxu1 %v88_v2  ;;  %v68_v17 = vld [vmem:[#allocation2 + $0xa8] sm:$0xff]  ;;  %v47_v18 = vld [vmem:[#allocation2] sm:$0xff]  ;;  %v54_v19 = vld [vmem:[#allocation2 + $0x38] sm:$0xff] }
  0x13   :  { %338 = vmatpush.msra.mxu2 %v87_v3  ;;  %339 = vmatpush.msra.mxu3 %v87_v3  ;;  %v62_v20 = vld [vmem:[#allocation2 + $0x78] sm:$0xff]  ;;  %v69_v21 = vld [vmem:[#allocation2 + $0xb0] sm:$0xff]  ;;  %v48_v22 = vld [vmem:[#allocation2 + $0x8] sm:$0xff] }
  0x14   :  { %98 = vmatpush.msra.mxu0 %v87_v3  ;;  %337 = vmatpush.msra.mxu1 %v87_v3  ;;  %v55_v23 = vld [vmem:[#allocation2 + $0x40] sm:$0xff]  ;;  %v70_v25 = vld [vmem:[#allocation2 + $0xb8] sm:$0xff]  ;;  %v49_v26 = vld [vmem:[#allocation2 + $0x10] sm:$0xff] }
  0x15   :  { %341 = vmatpush.msra.mxu2 %v86_v4  ;;  %342 = vmatpush.msra.mxu3 %v86_v4  ;;  %v63_v24 = vld [vmem:[#allocation2 + $0x80] sm:$0xff]  ;;  %v56_v27 = vld [vmem:[#allocation2 + $0x48] sm:$0xff]  ;;  %v50_v30 = vld [vmem:[#allocation2 + $0x18] sm:$0xff] }
  0x16   :  { %99 = vmatpush.msra.mxu0 %v86_v4  ;;  %340 = vmatpush.msra.mxu1 %v86_v4  ;;  %v64_v28 = vld [vmem:[#allocation2 + $0x88] sm:$0xff]  ;;  %v71_v29 = vld [vmem:[#allocation2 + $0xc0] sm:$0xff]  ;;  %v57_v31 = vld [vmem:[#allocation2 + $0x50] sm:$0xff] }
  0x17   :  { %344 = vmatpush.msra.mxu2 %v85_v5  ;;  %345 = vmatpush.msra.mxu3 %v85_v5  ;;  %v65_v32 = vld [vmem:[#allocation2 + $0x90] sm:$0xff]  ;;  %v72_v33 = vld [vmem:[#allocation2 + $0xc8] sm:$0xff]  ;;  %v51_v34 = vld [vmem:[#allocation2 + $0x20] sm:$0xff] }
  0x18   :  { %100 = vmatpush.msra.mxu0 %v85_v5  ;;  %343 = vmatpush.msra.mxu1 %v85_v5  ;;  %v58_v35 = vld [vmem:[#allocation2 + $0x58] sm:$0xff]  ;;  %v73_v37 = vld [vmem:[#allocation2 + $0xd0] sm:$0xff]  ;;  %v52_v38 = vld [vmem:[#allocation2 + $0x28] sm:$0xff] }
  0x19   :  { %347 = vmatpush.msra.mxu2 %v84_v6  ;;  %348 = vmatpush.msra.mxu3 %v84_v6  ;;  %v66_v36 = vld [vmem:[#allocation2 + $0x98] sm:$0xff]  ;;  %v59_v39 = vld [vmem:[#allocation2 + $0x60] sm:$0xff]  ;;  %v53_v42 = vld [vmem:[#allocation2 + $0x30] sm:$0xff] }
  0x1a   :  { %101 = vmatpush.msra.mxu0 %v84_v6  ;;  %346 = vmatpush.msra.mxu1 %v84_v6  ;;  %v67_v40 = vld [vmem:[#allocation2 + $0xa0] sm:$0xff]  ;;  %v74_v41 = vld [vmem:[#allocation2 + $0xd8] sm:$0xff]  ;;  %v60_v43 = vld [vmem:[#allocation2 + $0x68] sm:$0xff] }
  0x1b   :  { %350 = vmatpush.msra.mxu2 %v83_v7  ;;  %351 = vmatpush.msra.mxu3 %v83_v7  ;;  %v500_v44 = vld [vmem:[%s538_s2] ss:$0 sm:$0xff]  ;;  %s464_s2 = smov [#allocation7]  }
  0x1c   :  { %102 = vmatpush.msra.mxu0 %v83_v7  ;;  %349 = vmatpush.msra.mxu1 %v83_v7  ;;  %s312_s24 = sshll.u32 %s464_s2, 4  ;;  %s313_s24 = int_to_ptr.vmem [resolvable:$true] %s312_s24 }
  0x1d   :  { %353 = vmatpush.msra.mxu2 %v82_v8  ;;  %354 = vmatpush.msra.mxu3 %v82_v8 }
  0x1e   :  { %103 = vmatpush.msra.mxu0 %v82_v8  ;;  %352 = vmatpush.msra.mxu1 %v82_v8 }
  0x1f   :  { %356 = vmatpush.msra.mxu2 %v81_v9  ;;  %357 = vmatpush.msra.mxu3 %v81_v9 }
  0x20   :  { %104 = vmatpush.msra.mxu0 %v81_v9  ;;  %355 = vmatpush.msra.mxu1 %v81_v9 }
  0x21   :  { %359 = vmatpush.msra.mxu2 %v80_v10  ;;  %360 = vmatpush.msra.mxu3 %v80_v10 }
  0x22   :  { %105 = vmatpush.msra.mxu0 %v80_v10  ;;  %358 = vmatpush.msra.mxu1 %v80_v10 }
  0x23   :  { %362 = vmatpush.msra.mxu2 %v79_v11  ;;  %363 = vmatpush.msra.mxu3 %v79_v11 }
  0x24   :  { %106 = vmatpush.msra.mxu0 %v79_v11  ;;  %361 = vmatpush.msra.mxu1 %v79_v11 }
  0x25   :  { %365 = vmatpush.msra.mxu2 %v78_v12  ;;  %366 = vmatpush.msra.mxu3 %v78_v12 }
  0x26   :  { %107 = vmatpush.msra.mxu0 %v78_v12  ;;  %364 = vmatpush.msra.mxu1 %v78_v12 }
  0x27   :  { %368 = vmatpush.msra.mxu2 %v77_v13  ;;  %369 = vmatpush.msra.mxu3 %v77_v13 }
  0x28   :  { %108 = vmatpush.msra.mxu0 %v77_v13  ;;  %367 = vmatpush.msra.mxu1 %v77_v13 }
  0x29   :  { %371 = vmatpush.msra.mxu2 %v76_v14  ;;  %372 = vmatpush.msra.mxu3 %v76_v14 }
  0x2a   :  { %109 = vmatpush.msra.mxu0 %v76_v14  ;;  %370 = vmatpush.msra.mxu1 %v76_v14 }
  0x2b   :  { %374 = vmatpush.msra.mxu2 %v75_v15  ;;  %375 = vmatpush.msra.mxu3 %v75_v15 }
  0x2c   :  { %153 = vmatmul.f32.vlgmr.msra.gmra.mxu2 %v61_v16  ;;  %174 = vmatmul.f32.vlgmr.msra.gmra.mxu3 %v68_v17 }
  0x2d   :  { %110 = vmatpush.msra.mxu0 %v75_v15  ;;  %373 = vmatpush.msra.mxu1 %v75_v15 }
  0x2e   :  { %111 = vmatmul.f32.vlgmr.msra.gmra.mxu0 %v47_v18  ;;  %132 = vmatmul.f32.vlgmr.msra.gmra.mxu1 %v54_v19 }
  0x34   :  { %156 = vmatmul.f32.gmra.mxu2 %v62_v20  ;;  %177 = vmatmul.f32.gmra.mxu3 %v69_v21 }
  0x36   :  { %114 = vmatmul.f32.gmra.mxu0 %v48_v22  ;;  %135 = vmatmul.f32.gmra.mxu1 %v55_v23 }
  0x3c   :  { %159 = vmatmul.f32.gmra.mxu2 %v63_v24  ;;  %180 = vmatmul.f32.gmra.mxu3 %v70_v25 }
  0x3e   :  { %117 = vmatmul.f32.gmra.mxu0 %v49_v26  ;;  %138 = vmatmul.f32.gmra.mxu1 %v56_v27 }
  0x44   :  { %162 = vmatmul.f32.gmra.mxu2 %v64_v28  ;;  %183 = vmatmul.f32.gmra.mxu3 %v71_v29 }
  0x46   :  { %120 = vmatmul.f32.gmra.mxu0 %v50_v30  ;;  %141 = vmatmul.f32.gmra.mxu1 %v57_v31 }
  0x4c   :  { %165 = vmatmul.f32.gmra.mxu2 %v65_v32  ;;  %186 = vmatmul.f32.gmra.mxu3 %v72_v33 }
  0x4e   :  { %123 = vmatmul.f32.gmra.mxu0 %v51_v34  ;;  %144 = vmatmul.f32.gmra.mxu1 %v58_v35 }
  0x54   :  { %168 = vmatmul.f32.gmra.mxu2 %v66_v36  ;;  %189 = vmatmul.f32.gmra.mxu3 %v73_v37 }
  0x56   :  { %126 = vmatmul.f32.gmra.mxu0 %v52_v38  ;;  %147 = vmatmul.f32.gmra.mxu1 %v59_v39 }
  0x5c   :  { %171 = vmatmul.f32.gmra.mxu2 %v67_v40  ;;  %192 = vmatmul.f32.gmra.mxu3 %v74_v41 }
  0x5e   :  { %129 = vmatmul.f32.gmra.mxu0 %v53_v42  ;;  %150 = vmatmul.f32.gmra.mxu1 %v60_v43 }
  0xab   :  { %v112_v45 = vpop.f32.mrf.mxu0  ;;  %v133_v46 = vpop.f32.mrf.mxu1 }
  0xac   :  { %v113_v47 = vadd.f32 %v500_v44, %v112_v45  ;;  %v134_v48 = vadd.f32 %v500_v44, %v133_v46 }
  0xae   :  { %vm196_vm0 = vcmp.ge.f32.partialorder %v113_v47, 0.0  ;;  %v224_v49 = vmul.f32 0.2, %v113_v47  ;;  %vm203_vm1 = vcmp.ge.f32.partialorder %v134_v48, 0.0  ;;  %v231_v50 = vmul.f32 0.2, %v134_v48 }
  0xaf   :  { %v154_v51 = vpop.f32.mrf.mxu2  ;;  %v175_v52 = vpop.f32.mrf.mxu3 }
  0xb0   :  { %v252_v53 = vsel %vm196_vm0, %v113_v47, %v224_v49  ;;  %v259_v54 = vsel %vm203_vm1, %v134_v48, %v231_v50  ;;  %v155_v55 = vadd.f32 %v500_v44, %v154_v51  ;;  %v176_v56 = vadd.f32 %v500_v44, %v175_v52 }
  0xb1   :  { %280 = vst [vmem:[#allocation7] sm:$0xff] %v252_v53 }
  0xb2   :  { %287 = vst [vmem:[#allocation7 + $0x38] sm:$0xff] %v259_v54  ;;  %vm210_vm2 = vcmp.ge.f32.partialorder %v155_v55, 0.0  ;;  %v238_v57 = vmul.f32 0.2, %v155_v55  ;;  %vm217_vm3 = vcmp.ge.f32.partialorder %v176_v56, 0.0 }
  0xb3   :  { %v245_v58 = vmul.f32 0.2, %v176_v56  ;;  %v115_v59 = vpop.f32.mrf.mxu0  ;;  %v136_v60 = vpop.f32.mrf.mxu1 }
  0xb4   :  { %v266_v61 = vsel %vm210_vm2, %v155_v55, %v238_v57  ;;  %v116_v62 = vadd.f32 %v500_v44, %v115_v59  ;;  %v137_v63 = vadd.f32 %v500_v44, %v136_v60 }
  0xb5   :  { %294 = vst [vmem:[#allocation7 + $0x70] sm:$0xff] %v266_v61  ;;  %v273_v0 = vsel %vm217_vm3, %v176_v56, %v245_v58 }
  0xb6   :  { %301 = vst [vmem:[#allocation7 + $0xa8] sm:$0xff] %v273_v0  ;;  %vm197_vm4 = vcmp.ge.f32.partialorder %v116_v62, 0.0  ;;  %v225_v1 = vmul.f32 0.2, %v116_v62  ;;  %vm204_vm5 = vcmp.ge.f32.partialorder %v137_v63, 0.0 }
  0xb7   :  { %v232_v2 = vmul.f32 0.2, %v137_v63  ;;  %v157_v3 = vpop.f32.mrf.mxu2  ;;  %v178_v4 = vpop.f32.mrf.mxu3 }
  0xb8   :  { %v253_v5 = vsel %vm197_vm4, %v116_v62, %v225_v1  ;;  %v158_v6 = vadd.f32 %v500_v44, %v157_v3  ;;  %v179_v7 = vadd.f32 %v500_v44, %v178_v4 }
  0xb9   :  { %281 = vst [vmem:[#allocation7 + $0x8] sm:$0xff] %v253_v5  ;;  %v260_v8 = vsel %vm204_vm5, %v137_v63, %v232_v2 }
  0xba   :  { %288 = vst [vmem:[#allocation7 + $0x40] sm:$0xff] %v260_v8  ;;  %vm211_vm6 = vcmp.ge.f32.partialorder %v158_v6, 0.0  ;;  %v239_v9 = vmul.f32 0.2, %v158_v6  ;;  %vm218_vm7 = vcmp.ge.f32.partialorder %v179_v7, 0.0 }
  0xbb   :  { %v246_v10 = vmul.f32 0.2, %v179_v7  ;;  %v118_v11 = vpop.f32.mrf.mxu0  ;;  %v139_v12 = vpop.f32.mrf.mxu1 }
  0xbc   :  { %v267_v13 = vsel %vm211_vm6, %v158_v6, %v239_v9  ;;  %v119_v14 = vadd.f32 %v500_v44, %v118_v11  ;;  %v140_v15 = vadd.f32 %v500_v44, %v139_v12 }
  0xbd   :  { %295 = vst [vmem:[#allocation7 + $0x78] sm:$0xff] %v267_v13  ;;  %v274_v16 = vsel %vm218_vm7, %v179_v7, %v246_v10 }
  0xbe   :  { %302 = vst [vmem:[#allocation7 + $0xb0] sm:$0xff] %v274_v16  ;;  %vm198_vm8 = vcmp.ge.f32.partialorder %v119_v14, 0.0  ;;  %v226_v17 = vmul.f32 0.2, %v119_v14  ;;  %vm205_vm9 = vcmp.ge.f32.partialorder %v140_v15, 0.0 }
  0xbf   :  { %v233_v18 = vmul.f32 0.2, %v140_v15  ;;  %v160_v19 = vpop.f32.mrf.mxu2  ;;  %v181_v20 = vpop.f32.mrf.mxu3 }
  0xc0   :  { %v254_v21 = vsel %vm198_vm8, %v119_v14, %v226_v17  ;;  %v161_v22 = vadd.f32 %v500_v44, %v160_v19  ;;  %v182_v23 = vadd.f32 %v500_v44, %v181_v20 }
  0xc1   :  { %282 = vst [vmem:[#allocation7 + $0x10] sm:$0xff] %v254_v21  ;;  %v261_v24 = vsel %vm205_vm9, %v140_v15, %v233_v18 }
  0xc2   :  { %289 = vst [vmem:[#allocation7 + $0x48] sm:$0xff] %v261_v24  ;;  %vm212_vm10 = vcmp.ge.f32.partialorder %v161_v22, 0.0  ;;  %v240_v25 = vmul.f32 0.2, %v161_v22  ;;  %vm219_vm11 = vcmp.ge.f32.partialorder %v182_v23, 0.0 }
  0xc3   :  { %v247_v26 = vmul.f32 0.2, %v182_v23  ;;  %v121_v27 = vpop.f32.mrf.mxu0  ;;  %v142_v28 = vpop.f32.mrf.mxu1 }
  0xc4   :  { %v268_v29 = vsel %vm212_vm10, %v161_v22, %v240_v25  ;;  %v122_v30 = vadd.f32 %v500_v44, %v121_v27  ;;  %v143_v31 = vadd.f32 %v500_v44, %v142_v28 }
  0xc5   :  { %296 = vst [vmem:[#allocation7 + $0x80] sm:$0xff] %v268_v29  ;;  %v275_v32 = vsel %vm219_vm11, %v182_v23, %v247_v26 }
  0xc6   :  { %303 = vst [vmem:[#allocation7 + $0xb8] sm:$0xff] %v275_v32  ;;  %vm199_vm12 = vcmp.ge.f32.partialorder %v122_v30, 0.0  ;;  %v227_v33 = vmul.f32 0.2, %v122_v30  ;;  %vm206_vm13 = vcmp.ge.f32.partialorder %v143_v31, 0.0 }
  0xc7   :  { %v234_v34 = vmul.f32 0.2, %v143_v31  ;;  %v163_v35 = vpop.f32.mrf.mxu2  ;;  %v184_v36 = vpop.f32.mrf.mxu3 }
  0xc8   :  { %v255_v37 = vsel %vm199_vm12, %v122_v30, %v227_v33  ;;  %v164_v38 = vadd.f32 %v500_v44, %v163_v35  ;;  %v185_v39 = vadd.f32 %v500_v44, %v184_v36 }
  0xc9   :  { %283 = vst [vmem:[#allocation7 + $0x18] sm:$0xff] %v255_v37  ;;  %v262_v40 = vsel %vm206_vm13, %v143_v31, %v234_v34 }
  0xca   :  { %290 = vst [vmem:[#allocation7 + $0x50] sm:$0xff] %v262_v40  ;;  %vm213_vm14 = vcmp.ge.f32.partialorder %v164_v38, 0.0  ;;  %v241_v41 = vmul.f32 0.2, %v164_v38  ;;  %vm220_vm15 = vcmp.ge.f32.partialorder %v185_v39, 0.0 }
  0xcb   :  { %v248_v42 = vmul.f32 0.2, %v185_v39  ;;  %v124_v43 = vpop.f32.mrf.mxu0  ;;  %v145_v45 = vpop.f32.mrf.mxu1 }
  0xcc   :  { %v269_v46 = vsel %vm213_vm14, %v164_v38, %v241_v41  ;;  %v125_v47 = vadd.f32 %v500_v44, %v124_v43  ;;  %v146_v48 = vadd.f32 %v500_v44, %v145_v45 }
  0xcd   :  { %297 = vst [vmem:[#allocation7 + $0x88] sm:$0xff] %v269_v46  ;;  %v276_v49 = vsel %vm220_vm15, %v185_v39, %v248_v42 }
  0xce   :  { %304 = vst [vmem:[#allocation7 + $0xc0] sm:$0xff] %v276_v49  ;;  %vm200_vm0 = vcmp.ge.f32.partialorder %v125_v47, 0.0  ;;  %v228_v50 = vmul.f32 0.2, %v125_v47  ;;  %vm207_vm1 = vcmp.ge.f32.partialorder %v146_v48, 0.0 }
  0xcf   :  { %v235_v51 = vmul.f32 0.2, %v146_v48  ;;  %v166_v52 = vpop.f32.mrf.mxu2  ;;  %v187_v53 = vpop.f32.mrf.mxu3 }
  0xd0   :  { %v256_v54 = vsel %vm200_vm0, %v125_v47, %v228_v50  ;;  %v167_v55 = vadd.f32 %v500_v44, %v166_v52  ;;  %v188_v56 = vadd.f32 %v500_v44, %v187_v53 }
  0xd1   :  { %284 = vst [vmem:[#allocation7 + $0x20] sm:$0xff] %v256_v54  ;;  %v263_v57 = vsel %vm207_vm1, %v146_v48, %v235_v51 }
  0xd2   :  { %291 = vst [vmem:[#allocation7 + $0x58] sm:$0xff] %v263_v57  ;;  %vm214_vm2 = vcmp.ge.f32.partialorder %v167_v55, 0.0  ;;  %v242_v58 = vmul.f32 0.2, %v167_v55  ;;  %vm221_vm3 = vcmp.ge.f32.partialorder %v188_v56, 0.0 }
  0xd3   :  { %v249_v59 = vmul.f32 0.2, %v188_v56  ;;  %v127_v60 = vpop.f32.mrf.mxu0  ;;  %v148_v61 = vpop.f32.mrf.mxu1 }
  0xd4   :  { %v270_v62 = vsel %vm214_vm2, %v167_v55, %v242_v58  ;;  %v128_v63 = vadd.f32 %v500_v44, %v127_v60  ;;  %v149_v0 = vadd.f32 %v500_v44, %v148_v61 }
  0xd5   :  { %298 = vst [vmem:[#allocation7 + $0x90] sm:$0xff] %v270_v62  ;;  %v277_v1 = vsel %vm221_vm3, %v188_v56, %v249_v59 }
  0xd6   :  { %305 = vst [vmem:[#allocation7 + $0xc8] sm:$0xff] %v277_v1  ;;  %vm201_vm4 = vcmp.ge.f32.partialorder %v128_v63, 0.0  ;;  %v229_v2 = vmul.f32 0.2, %v128_v63  ;;  %vm208_vm5 = vcmp.ge.f32.partialorder %v149_v0, 0.0 }
  0xd7   :  { %v236_v3 = vmul.f32 0.2, %v149_v0  ;;  %v169_v4 = vpop.f32.mrf.mxu2  ;;  %v190_v5 = vpop.f32.mrf.mxu3 }
  0xd8   :  { %v257_v6 = vsel %vm201_vm4, %v128_v63, %v229_v2  ;;  %v170_v7 = vadd.f32 %v500_v44, %v169_v4  ;;  %v191_v8 = vadd.f32 %v500_v44, %v190_v5 }
  0xd9   :  { %285 = vst [vmem:[#allocation7 + $0x28] sm:$0xff] %v257_v6  ;;  %v264_v9 = vsel %vm208_vm5, %v149_v0, %v236_v3 }
  0xda   :  { %292 = vst [vmem:[#allocation7 + $0x60] sm:$0xff] %v264_v9  ;;  %vm215_vm6 = vcmp.ge.f32.partialorder %v170_v7, 0.0  ;;  %v243_v10 = vmul.f32 0.2, %v170_v7  ;;  %vm222_vm7 = vcmp.ge.f32.partialorder %v191_v8, 0.0 }
  0xdb   :  { %v250_v11 = vmul.f32 0.2, %v191_v8  ;;  %v130_v12 = vpop.f32.mrf.mxu0  ;;  %v151_v13 = vpop.f32.mrf.mxu1 }
  0xdc   :  { %v271_v14 = vsel %vm215_vm6, %v170_v7, %v243_v10  ;;  %v131_v15 = vadd.f32 %v500_v44, %v130_v12  ;;  %v152_v16 = vadd.f32 %v500_v44, %v151_v13 }
  0xdd   :  { %299 = vst [vmem:[#allocation7 + $0x98] sm:$0xff] %v271_v14  ;;  %v278_v17 = vsel %vm222_vm7, %v191_v8, %v250_v11 }
  0xde   :  { %306 = vst [vmem:[#allocation7 + $0xd0] sm:$0xff] %v278_v17  ;;  %vm202_vm8 = vcmp.ge.f32.partialorder %v131_v15, 0.0  ;;  %v230_v18 = vmul.f32 0.2, %v131_v15  ;;  %vm209_vm9 = vcmp.ge.f32.partialorder %v152_v16, 0.0 }
  0xdf   :  { %v237_v19 = vmul.f32 0.2, %v152_v16  ;;  %v172_v20 = vpop.f32.mrf.mxu2  ;;  %v193_v21 = vpop.f32.mrf.mxu3 }
  0xe0   :  { %v258_v22 = vsel %vm202_vm8, %v131_v15, %v230_v18  ;;  %v173_v23 = vadd.f32 %v500_v44, %v172_v20  ;;  %v194_v24 = vadd.f32 %v500_v44, %v193_v21 }
  0xe1   :  { %286 = vst [vmem:[#allocation7 + $0x30] sm:$0xff] %v258_v22  ;;  %v265_v25 = vsel %vm209_vm9, %v152_v16, %v237_v19 }
  0xe2   :  { %293 = vst [vmem:[#allocation7 + $0x68] sm:$0xff] %v265_v25  ;;  %vm216_vm10 = vcmp.ge.f32.partialorder %v173_v23, 0.0  ;;  %v244_v26 = vmul.f32 0.2, %v173_v23  ;;  %vm223_vm11 = vcmp.ge.f32.partialorder %v194_v24, 0.0 }
  0xe3   :  { %v251_v27 = vmul.f32 0.2, %v194_v24 }
  0xe4   :  { %v272_v28 = vsel %vm216_vm10, %v173_v23, %v244_v26 }
  0xe5   :  { %300 = vst [vmem:[#allocation7 + $0xa0] sm:$0xff] %v272_v28  ;;  %v279_v29 = vsel %vm223_vm11, %v194_v24, %v251_v27 }
  0xe6   :  { %307 = vst [vmem:[#allocation7 + $0xd8] sm:$0xff] %v279_v29 }
  0xe7   :  { %320 = dma.vmem_to_hbm [thread:$0]  %s313_s24, 3584, %s315_s27, [#allocation4], %s461_s20, %s461_s20, %s462_s21  }
  0xe8   :  { %458 = dma.done.wait [#allocation4], 3584  }
  0xe9   :  { %459 = vsyncadd [#allocation4], 4294963712 }
  0xea   :  { %325 = vsyncpa [#allocation3], 1 }
  0xeb   :  { %326 = vsyncpa [#allocation6], 1 }
  0xec   :  { %327 = vsyncpa [#allocation4], 1 }

</bundles_post_ra>
